<compile_context>
chip_gen: v6e
topology: v6e:2x2x1
jax: 0.10.0
libtpu: 0.0.40
codegen_flags: <defaults>
</compile_context>

<pallas_src>
import functools

import jax
import jax.numpy as jnp
from jax.experimental import pallas as pl
from jax.experimental.pallas import tpu as pltpu

_LANE = 128    # lane width: output/hidden feature dims are padded to this
_SUBLANE = 8   # f32 sublane: batch tiles are multiples of this


def _round_up(n, m):
    return ((n + m - 1) // m) * m


def _make_actor_kernel(n_layers):
    """[Linear+ReLU]*(n-1) -> Linear+Tanh, then the extra forward() tanh."""

    def kernel(x_ref, *refs):
        o_ref = refs[-1]
        wb = refs[:-1]
        h = x_ref[...]                      # f32 activations
        for layer in range(n_layers):
            w = wb[2 * layer][...]          # already in matmul dtype (pre-cast)
            b = wb[2 * layer + 1][...]      # f32 bias
            # MXU matmul with explicit f32 accumulation; bias/activation
            # epilogue stays f32 (v5e VPU/EUP have no bf16 path).
            h = jnp.dot(h.astype(w.dtype), w,
                        preferred_element_type=jnp.float32) + b
            if layer < n_layers - 1:
                h = jnp.maximum(h, 0.0)
            else:
                h = jnp.tanh(h)             # nn.Tanh inside self.net
        # Extra torch.tanh applied in forward() on top of the net output.
        o_ref[...] = jnp.tanh(h).astype(o_ref.dtype)

    return kernel


def pad_params(params, matmul_dtype=jnp.float32):
    """Pad/cast (w, b) pairs ONCE at init.

    Output (lane) dims are zero-padded to multiples of 128 so every hidden /
    output store is lane-dense; the FIRST layer keeps its unpadded input dim
    (x is passed with its native feature width), later layers' input dims
    match the previous layer's padded output. Zero padding is exact for this
    MLP: padded hidden units stay 0 through bias=0/ReLU and padded output
    columns are sliced off (or ignored) after the kernel. Weights are cast to
    matmul_dtype here (bf16 halves their DMA/VMEM); biases stay f32 for the
    f32 epilogue.
    """
    padded = []
    prev_out_p = None
    for idx, (w, b) in enumerate(params):
        fi, fo = w.shape
        fi_p = fi if idx == 0 else prev_out_p
        fo_p = _round_up(fo, _LANE)
        w_p = jnp.zeros((fi_p, fo_p), matmul_dtype).at[:fi, :fo].set(
            w.astype(matmul_dtype))
        b_p = jnp.zeros((1, fo_p), jnp.float32).at[:, :fo].set(
            b.astype(jnp.float32))
        padded.append((w_p, b_p))
        prev_out_p = fo_p
    return padded


def _choose_tile(batch, tile_m):
    """Pick the batch tile: multiple of 8, grid>=2 when batch>8 (v7x 2-TC),
    padding bounded to <8 rows per tile, tiles grow to tile_m for big batches."""
    batch_r = _round_up(batch, _SUBLANE)
    if batch_r <= _SUBLANE:
        return _SUBLANE
    num_tiles = max(2, pl.cdiv(batch_r, tile_m))
    return _round_up(pl.cdiv(batch_r, num_tiles), _SUBLANE)


@functools.partial(jax.jit,
                   static_argnames=("out_dim", "tile_m", "return_padded"))
def _pallas_forward(x, padded_params, out_dim, tile_m=512, return_padded=False):
    batch, in_dim = x.shape
    n_layers = len(padded_params)
    out_p = padded_params[-1][0].shape[1]

    tm = _choose_tile(batch, tile_m)
    grid = pl.cdiv(batch, tm)
    batch_p = grid * tm

    # Only row-pad (never lane-pad) the observation; zeros rows are sliced off.
    x = x.astype(jnp.float32)
    if batch_p != batch:
        x = jnp.pad(x, ((0, batch_p - batch), (0, 0)))

    resident = pl.Buffered(buffer_count=1)   # constant index_map -> 1 buffer
    flat_params = []
    in_specs = [pl.BlockSpec((tm, in_dim), lambda i: (i, 0))]  # batch-tiled x
    for w, b in padded_params:
        flat_params += [w, b]
        # Full-array blocks with constant index_map: DMA'd once, VMEM-resident
        # across all batch tiles, single-buffered.
        in_specs.append(pl.BlockSpec(w.shape, lambda i: (0, 0),
                                     pipeline_mode=resident))
        in_specs.append(pl.BlockSpec(b.shape, lambda i: (0, 0),
                                     pipeline_mode=resident))

    flops = 2 * batch_p * sum(int(w.shape[0]) * int(w.shape[1])
                              for w, _ in padded_params)
    transcendentals = 2 * batch_p * int(out_p)   # tanh(tanh(.)) on the output
    param_bytes = sum(int(w.size) * w.dtype.itemsize +
                      int(b.size) * b.dtype.itemsize
                      for w, b in padded_params)
    bytes_accessed = 4 * (int(x.size) + batch_p * int(out_p)) + param_bytes

    out_padded = pl.pallas_call(
        _make_actor_kernel(n_layers),
        out_shape=jax.ShapeDtypeStruct((batch_p, out_p), jnp.float32),
        grid_spec=pltpu.PrefetchScalarGridSpec(
            num_scalar_prefetch=0,
            grid=(grid,),
            in_specs=in_specs,
            out_specs=pl.BlockSpec((tm, out_p), lambda i: (i, 0)),
        ),
        compiler_params=pltpu.CompilerParams(
            # Batch tiles are independent -> shard across v7x's 2 TensorCores.
            dimension_semantics=("parallel",)),
        cost_estimate=pl.CostEstimate(
            flops=int(flops),
            transcendentals=int(transcendentals),
            bytes_accessed=int(bytes_accessed)),
    )(x, *flat_params)

    if return_padded:
        return out_padded            # consumer takes the lane-padded slab
    return out_padded[:batch, :out_dim]


def _xla_forward(x, padded_params):
    """Fused XLA MLP (same math) for the tiny-batch latency regime."""
    h = x.astype(jnp.float32)
    n = len(padded_params)
    for i, (w, b) in enumerate(padded_params):
        h = jnp.dot(h.astype(w.dtype), w,
                    preferred_element_type=jnp.float32) + b
        h = jnp.maximum(h, 0.0) if i < n - 1 else jnp.tanh(h)
    return jnp.tanh(h)


def non_stoch_actor_forward(x, padded_params, out_dim, *, tile_m=512,
                            min_pallas_batch=0, return_padded=False):
    """Dispatcher: plain XLA below min_pallas_batch (launch overhead dominates
    for a few rows), Pallas kernel otherwise. In production set
    min_pallas_batch to ~a few hundred rows."""
    if x.shape[0] < min_pallas_batch:
        out = _xla_forward(x, padded_params)
        return out if return_padded else out[:x.shape[0], :out_dim]
    return _pallas_forward(x, padded_params, out_dim, tile_m=tile_m,
                           return_padded=return_padded)


def init_params(key, input_dim, hidden_dims, output_dim):
    """Deterministic PyTorch-style uniform(-1/sqrt(fan_in), 1/sqrt(fan_in)) init."""
    dims = [input_dim] + list(hidden_dims) + [output_dim]
    params = []
    for i in range(len(dims) - 1):
        fan_in, fan_out = dims[i], dims[i + 1]
        key, kw, kb = jax.random.split(key, 3)
        bound = 1.0 / jnp.sqrt(jnp.float32(fan_in))
        w = jax.random.uniform(kw, (fan_in, fan_out), jnp.float32, -bound, bound)
        b = jax.random.uniform(kb, (1, fan_out), jnp.float32, -bound, bound)
        params.append((w, b))
    return params


def reference_forward(x, params):
    h = x
    n = len(params)
    for i, (w, b) in enumerate(params):
        h = h @ w + b
        if i < n - 1:
            h = jnp.maximum(h, 0.0)
        else:
            h = jnp.tanh(h)
    return jnp.tanh(h)


if __name__ == "__main__":
    input_dim = 32
    hidden_dims = [32, 32]
    output_dim = 16

    key = jax.random.PRNGKey(0)
    key, kx1, kx2 = jax.random.split(key, 3)
    params = init_params(key, input_dim, hidden_dims, output_dim)

    # ---- f32 matmul path (single-tile grid), tight parity check ----
    padded_f32 = pad_params(params, matmul_dtype=jnp.float32)
    x1 = jax.random.normal(kx1, (8, input_dim), jnp.float32)
    out1 = jax.block_until_ready(
        non_stoch_actor_forward(x1, padded_f32, output_dim))
    ref1 = reference_forward(x1, params)
    assert out1.shape == (8, output_dim)
    assert jnp.allclose(out1, ref1, atol=1e-5, rtol=1e-5)

    # ---- bf16 matmul operands (f32 accum/epilogue), multi-tile grid ----
    padded_bf16 = pad_params(params, matmul_dtype=jnp.bfloat16)
    x2 = jax.random.normal(kx2, (20, input_dim), jnp.float32)
    out2 = jax.block_until_ready(
        non_stoch_actor_forward(x2, padded_bf16, output_dim))
    ref2 = reference_forward(x2, params)
    assert out2.shape == (20, output_dim)
    assert jnp.allclose(out2, ref2, atol=3e-2, rtol=3e-2)

    print("KERNEL_OK")
</pallas_src>

<mosaic_0001>
module attributes {stable_mosaic.version = 11 : i64} {
  func.func @kernel(%arg0: i32, %arg1: memref<8x32xf32, #tpu.memory_space<vmem>>, %arg2: memref<32x128xf32, #tpu.memory_space<vmem>>, %arg3: memref<1x128xf32, #tpu.memory_space<vmem>>, %arg4: memref<128x128xf32, #tpu.memory_space<vmem>>, %arg5: memref<1x128xf32, #tpu.memory_space<vmem>>, %arg6: memref<128x128xf32, #tpu.memory_space<vmem>>, %arg7: memref<1x128xf32, #tpu.memory_space<vmem>>, %arg8: memref<8x128xf32, #tpu.memory_space<vmem>>) attributes {dimension_semantics = [#tpu.dimension_semantics<parallel>], iteration_bounds = array<i64: 1>, scalar_prefetch = 0 : i64, scratch_operands = 0 : i64, tpu.core_type = #tpu.core_type<tc>, window_params = [{transform_indices = @transform_0, window_bounds = array<i64: 8, 32>}, {pipeline_mode = #tpu.pipeline_mode<synchronous>, transform_indices = @transform_1, window_bounds = array<i64: 32, 128>}, {pipeline_mode = #tpu.pipeline_mode<synchronous>, transform_indices = @transform_2, window_bounds = array<i64: 1, 128>}, {pipeline_mode = #tpu.pipeline_mode<synchronous>, transform_indices = @transform_3, window_bounds = array<i64: 128, 128>}, {pipeline_mode = #tpu.pipeline_mode<synchronous>, transform_indices = @transform_4, window_bounds = array<i64: 1, 128>}, {pipeline_mode = #tpu.pipeline_mode<synchronous>, transform_indices = @transform_5, window_bounds = array<i64: 128, 128>}, {pipeline_mode = #tpu.pipeline_mode<synchronous>, transform_indices = @transform_6, window_bounds = array<i64: 1, 128>}, {transform_indices = @transform_7, window_bounds = array<i64: 8, 128>}]} {
    %c0 = arith.constant 0 : index
    %c0_0 = arith.constant 0 : index
    %0 = vector.load %arg1[%c0, %c0_0] : memref<8x32xf32, #tpu.memory_space<vmem>>, vector<8x32xf32>
    %c0_1 = arith.constant 0 : index
    %c0_2 = arith.constant 0 : index
    %1 = vector.load %arg2[%c0_1, %c0_2] : memref<32x128xf32, #tpu.memory_space<vmem>>, vector<32x128xf32>
    %c0_3 = arith.constant 0 : index
    %c0_4 = arith.constant 0 : index
    %2 = vector.load %arg3[%c0_3, %c0_4] : memref<1x128xf32, #tpu.memory_space<vmem>>, vector<1x128xf32>
    %cst = arith.constant dense<0.000000e+00> : vector<8x128xf32>
    %3 = tpu.matmul %0, %1, %cst {dimension_numbers = #tpu.dot_dimension_numbers<[1], [0], [0], [1], [0, 0, 1, 1], [], []>} : vector<8x32xf32>, vector<32x128xf32>, vector<8x128xf32> -> vector<8x128xf32>
    %4 = vector.broadcast %2 : vector<1x128xf32> to vector<8x128xf32>
    %5 = arith.addf %3, %4 : vector<8x128xf32>
    %cst_5 = arith.constant 0.000000e+00 : f32
    %6 = vector.broadcast %cst_5 : f32 to vector<8x128xf32>
    %7 = arith.maximumf %5, %6 : vector<8x128xf32>
    %c0_6 = arith.constant 0 : index
    %c0_7 = arith.constant 0 : index
    %8 = vector.load %arg4[%c0_6, %c0_7] : memref<128x128xf32, #tpu.memory_space<vmem>>, vector<128x128xf32>
    %c0_8 = arith.constant 0 : index
    %c0_9 = arith.constant 0 : index
    %9 = vector.load %arg5[%c0_8, %c0_9] : memref<1x128xf32, #tpu.memory_space<vmem>>, vector<1x128xf32>
    %cst_10 = arith.constant dense<0.000000e+00> : vector<8x128xf32>
    %10 = tpu.matmul %7, %8, %cst_10 {dimension_numbers = #tpu.dot_dimension_numbers<[1], [0], [0], [1], [0, 0, 1, 1], [], []>} : vector<8x128xf32>, vector<128x128xf32>, vector<8x128xf32> -> vector<8x128xf32>
    %11 = vector.broadcast %9 : vector<1x128xf32> to vector<8x128xf32>
    %12 = arith.addf %10, %11 : vector<8x128xf32>
    %cst_11 = arith.constant 0.000000e+00 : f32
    %13 = vector.broadcast %cst_11 : f32 to vector<8x128xf32>
    %14 = arith.maximumf %12, %13 : vector<8x128xf32>
    %c0_12 = arith.constant 0 : index
    %c0_13 = arith.constant 0 : index
    %15 = vector.load %arg6[%c0_12, %c0_13] : memref<128x128xf32, #tpu.memory_space<vmem>>, vector<128x128xf32>
    %c0_14 = arith.constant 0 : index
    %c0_15 = arith.constant 0 : index
    %16 = vector.load %arg7[%c0_14, %c0_15] : memref<1x128xf32, #tpu.memory_space<vmem>>, vector<1x128xf32>
    %cst_16 = arith.constant dense<0.000000e+00> : vector<8x128xf32>
    %17 = tpu.matmul %14, %15, %cst_16 {dimension_numbers = #tpu.dot_dimension_numbers<[1], [0], [0], [1], [0, 0, 1, 1], [], []>} : vector<8x128xf32>, vector<128x128xf32>, vector<8x128xf32> -> vector<8x128xf32>
    %18 = vector.broadcast %16 : vector<1x128xf32> to vector<8x128xf32>
    %19 = arith.addf %17, %18 : vector<8x128xf32>
    %20 = math.tanh %19 : vector<8x128xf32>
    %21 = math.tanh %20 : vector<8x128xf32>
    %c0_17 = arith.constant 0 : index
    %c0_18 = arith.constant 0 : index
    %22 = vector.load %arg8[%c0_17, %c0_18] : memref<8x128xf32, #tpu.memory_space<vmem>>, vector<8x128xf32>
    tpu.vector_store %arg8[%c0_17, %c0_18], %21 {strides = array<i32>} : memref<8x128xf32, #tpu.memory_space<vmem>>, vector<8x128xf32>,
    return
  }
  func.func @transform_0(%arg0: i32) -> (i32, i32) {
    %c0_i32 = arith.constant 0 : i32
    %c0_i32_0 = arith.constant 0 : i32
    return %arg0, %c0_i32 : i32, i32
  }
  func.func @transform_1(%arg0: i32) -> (i32, i32) {
    %c0_i32 = arith.constant 0 : i32
    %c0_i32_0 = arith.constant 0 : i32
    %c0_i32_1 = arith.constant 0 : i32
    return %c0_i32, %c0_i32_0 : i32, i32
  }
  func.func @transform_2(%arg0: i32) -> (i32, i32) {
    %c0_i32 = arith.constant 0 : i32
    %c0_i32_0 = arith.constant 0 : i32
    %c0_i32_1 = arith.constant 0 : i32
    return %c0_i32, %c0_i32_0 : i32, i32
  }
  func.func @transform_3(%arg0: i32) -> (i32, i32) {
    %c0_i32 = arith.constant 0 : i32
    %c0_i32_0 = arith.constant 0 : i32
    %c0_i32_1 = arith.constant 0 : i32
    return %c0_i32, %c0_i32_0 : i32, i32
  }
  func.func @transform_4(%arg0: i32) -> (i32, i32) {
    %c0_i32 = arith.constant 0 : i32
    %c0_i32_0 = arith.constant 0 : i32
    %c0_i32_1 = arith.constant 0 : i32
    return %c0_i32, %c0_i32_0 : i32, i32
  }
  func.func @transform_5(%arg0: i32) -> (i32, i32) {
    %c0_i32 = arith.constant 0 : i32
    %c0_i32_0 = arith.constant 0 : i32
    %c0_i32_1 = arith.constant 0 : i32
    return %c0_i32, %c0_i32_0 : i32, i32
  }
  func.func @transform_6(%arg0: i32) -> (i32, i32) {
    %c0_i32 = arith.constant 0 : i32
    %c0_i32_0 = arith.constant 0 : i32
    %c0_i32_1 = arith.constant 0 : i32
    return %c0_i32, %c0_i32_0 : i32, i32
  }
  func.func @transform_7(%arg0: i32) -> (i32, i32) {
    %c0_i32 = arith.constant 0 : i32
    %c0_i32_0 = arith.constant 0 : i32
    return %arg0, %c0_i32 : i32, i32
  }
}

</mosaic_0001>

<bundles_post_ra>
// kernel: _pallas_forward.1
= control target key start
LH: loop header
LB: loop body
LE: loop exit
PB: predicated region body
PF: predicated region fallthrough
CT: control target
= control target key end

     0   :  { %12 = vsyncpa [#allocation3], 0  ;;  %s743_s0 = inlined_call_operand.hbm [shape: f32[8,32], index: 0, kind: input, shape index: {}]   ;;  %s744_s1 = inlined_call_operand.hbm [shape: f32[32,128], index: 1, kind: input, shape index: {}]   ;;  %s745_s2 = inlined_call_operand.vmem [shape: f32[1,128], index: 2, kind: input, shape index: {}]   ;;  %s746_s3 = inlined_call_operand.hbm [shape: f32[128,128], index: 3, kind: input, shape index: {}]   ;;  %s747_s4 = inlined_call_operand.vmem [shape: f32[1,128], index: 4, kind: input, shape index: {}]   ;;  %s748_s5 = inlined_call_operand.hbm [shape: f32[128,128], index: 5, kind: input, shape index: {}]   ;;  %s749_s6 = inlined_call_operand.vmem [shape: f32[1,128], index: 6, kind: input, shape index: {}]   ;;  %s750_s7 = inlined_call_operand.hbm [shape: f32[8,128], index: 7, kind: output, shape index: {}]  }
   0x1   :  { %13 = vsyncpa [#allocation6], 0 }
   0x2   :  { %14 = vsyncpa [#allocation9], 0 }
   0x3   :  { %15 = vsyncpa [#allocation4], 0  ;;  %s619_s24 = smov [#allocation5]  }
   0x4   :  { %s31_s25 = sshll.u32 %s619_s24, 4  ;;  %s32_s25 = int_to_ptr.vmem [resolvable:$true] %s31_s25 }
   0x5   :  { %s519_s26 = scalar_lea.vmem %s32_s25, 512  ;;  %p524_p1 = scmp.lt.s32.totalorder %s32_s25, %s32_s25 }
   0x6   :  { %p520_p0 = scmp.ne.s32.totalorder %s32_s25, %s519_s26  ;;  %p525_p2 = scmp.lt.s32.totalorder %s519_s26, %s519_s26 }
   0x8   :  { %p526_p3 = por %p525_p2, %p524_p1 }
   0xa   :  { %p527_p4 = pnand %p526_p3, %p520_p0 }
   0xc   :  { %530 = shalt.err (!%p527_p4)
}
   0xd   :  { %s620_s27 = smov 128   ;;  %s621_s28 = smov 8  }
   0xe   :  { %37 = dma.hbm_to_vmem [thread:$0]  %s744_s1, 512, %s32_s25, [#allocation6], %s620_s27, %s620_s27, %s621_s28  }
   0xf   :  { %s622_s8 = smov [#allocation2]   ;;  %s623_s10 = smov [#allocation7]  }
  0x10   :  { %s22_s9 = sshll.u32 %s622_s8, 4  ;;  %s45_s11 = sshll.u32 %s623_s10, 4  ;;  %s23_s9 = int_to_ptr.vmem [resolvable:$true] %s22_s9  ;;  %s46_s11 = int_to_ptr.vmem [resolvable:$true] %s45_s11 }
  0x11   :  { %s539_s12 = scalar_lea.vmem %s23_s9, 128  ;;  %p544_p6 = scmp.lt.s32.totalorder %s23_s9, %s23_s9 }
  0x12   :  { %p540_p5 = scmp.ne.s32.totalorder %s23_s9, %s539_s12  ;;  %p545_p7 = scmp.lt.s32.totalorder %s539_s12, %s539_s12 }
  0x14   :  { %p546_p8 = por %p545_p7, %p544_p6 }
  0x16   :  { %p547_p9 = pnand %p546_p8, %p540_p5 }
  0x18   :  { %550 = shalt.err (!%p547_p9)
}
  0x19   :  { %25 = dma.hbm_to_vmem [thread:$0]  %s743_s0, 128, %s23_s9, [#allocation3]  }
  0x1a   :  { %s559_s15 = scalar_lea.vmem %s46_s11, 2048  ;;  %p564_p11 = scmp.lt.s32.totalorder %s46_s11, %s46_s11 }
  0x1b   :  { %p560_p10 = scmp.ne.s32.totalorder %s46_s11, %s559_s15  ;;  %p565_p12 = scmp.lt.s32.totalorder %s559_s15, %s559_s15 }
  0x1d   :  { %p566_p13 = por %p565_p12, %p564_p11 }
  0x1f   :  { %p567_p0 = pnand %p566_p13, %p560_p10 }
  0x21   :  { %570 = shalt.err (!%p567_p0)
}
  0x22   :  { %51 = dma.hbm_to_vmem [thread:$0]  %s746_s3, 2048, %s46_s11, [#allocation6], %s620_s27, %s620_s27, %s621_s28  }
  0x23   :  { %s624_s17 = smov [#allocation8]  }
  0x24   :  { %s59_s18 = sshll.u32 %s624_s17, 4  ;;  %s60_s18 = int_to_ptr.vmem [resolvable:$true] %s59_s18 }
  0x25   :  { %s579_s19 = scalar_lea.vmem %s60_s18, 2048  ;;  %p584_p2 = scmp.lt.s32.totalorder %s60_s18, %s60_s18 }
  0x26   :  { %p580_p1 = scmp.ne.s32.totalorder %s60_s18, %s579_s19  ;;  %p585_p3 = scmp.lt.s32.totalorder %s579_s19, %s579_s19 }
  0x28   :  { %p586_p4 = por %p585_p3, %p584_p2 }
  0x2a   :  { %p587_p5 = pnand %p586_p4, %p580_p1 }
  0x2c   :  { %590 = shalt.err (!%p587_p5)
}
  0x2d   :  { %65 = dma.hbm_to_vmem [thread:$0]  %s748_s5, 2048, %s60_s18, [#allocation9], %s620_s27, %s620_s27, %s621_s28  }
  0x2e   :  { %611 = dma.done.wait [#allocation3], 128  }
  0x2f   :  { %612 = vsyncadd [#allocation3], 4294967168 }
  0x30   :  { %613 = dma.done.wait [#allocation6], 2560  }
  0x31   :  { %614 = vsyncadd [#allocation6], 4294964736 }
  0x32   :  { %615 = dma.done.wait [#allocation9], 2048  }
  0x33   :  { %616 = vsyncadd [#allocation9], 4294965248  ;;  %v625_v0 = vmov 0.0   ;;  %vm626_vm0 = vmmov 0   ;;  %v84_v1 = vld [vmem:[#allocation5 + $0x18] sm:$0xff]  ;;  %v83_v2 = vld [vmem:[#allocation5 + $0x10] sm:$0xff] }
  0x34   :  { %417 = vmatprep.subr.mxu0 %v625_v0  ;;  %425 = vmatprep.mubr.msk.f32.mxu0 %vm626_vm0, %v625_v0  ;;  %v182_v3 = vld [vmem:[#allocation7 + $0x78] sm:$0xff]  ;;  %v82_v4 = vld [vmem:[#allocation5 + $0x8] sm:$0xff]  ;;  %v181_v5 = vld [vmem:[#allocation7 + $0x70] sm:$0xff]  ;;  %vm92_vm1 = vcmask 261120   ;;  %s627_s24 = smov [#allocation10]  }
  0x35   :  { %428 = vmatprep.subr.mxu1 %v625_v0  ;;  %460 = vmatprep.mubr.msk.f32.mxu1 %vm626_vm0, %v625_v0  ;;  %v180_v6 = vld [vmem:[#allocation7 + $0x68] sm:$0xff]  ;;  %v81_v7 = vld [vmem:[#allocation5] sm:$0xff]  ;;  %v80_v8 = vld [vmem:[#allocation2] sm:$0xff]  ;;  %s363_s25 = sshll.u32 %s627_s24, 4  ;;  %s364_s25 = int_to_ptr.vmem [resolvable:$true] %s363_s25 }
  0x36   :  { %418 = vmatpush3.msra.mxu0 %v84_v1  ;;  %429 = vmatpush3.msra.mxu1 %v182_v3  ;;  %v179_v9 = vld [vmem:[#allocation7 + $0x60] sm:$0xff]  ;;  %v178_v10 = vld [vmem:[#allocation7 + $0x58] sm:$0xff]  ;;  %v177_v11 = vld [vmem:[#allocation7 + $0x50] sm:$0xff]  ;;  %p596_p7 = scmp.lt.s32.totalorder %s364_s25, %s364_s25 }
  0x37   :  { %419 = vmatprep.subr.mxu0 %v625_v0  ;;  %430 = vmatprep.subr.mxu1 %v625_v0  ;;  %v176_v12 = vld [vmem:[#allocation7 + $0x48] sm:$0xff]  ;;  %v175_v13 = vld [vmem:[#allocation7 + $0x40] sm:$0xff]  ;;  %v174_v14 = vld [vmem:[#allocation7 + $0x38] sm:$0xff] }
  0x38   :  { %420 = vmatpush3.msra.mxu0 %v83_v2  ;;  %431 = vmatpush3.msra.mxu1 %v181_v5  ;;  %v173_v15 = vld [vmem:[#allocation7 + $0x30] sm:$0xff]  ;;  %v172_v16 = vld [vmem:[#allocation7 + $0x28] sm:$0xff]  ;;  %v171_v17 = vld [vmem:[#allocation7 + $0x20] sm:$0xff] }
  0x39   :  { %421 = vmatprep.subr.mxu0 %v625_v0  ;;  %432 = vmatprep.subr.mxu1 %v625_v0  ;;  %v170_v18 = vld [vmem:[#allocation7 + $0x18] sm:$0xff]  ;;  %v169_v19 = vld [vmem:[#allocation7 + $0x10] sm:$0xff]  ;;  %v168_v20 = vld [vmem:[#allocation7 + $0x8] sm:$0xff] }
  0x3a   :  { %422 = vmatpush3.msra.mxu0 %v82_v4  ;;  %433 = vmatpush3.msra.mxu1 %v180_v6  ;;  %v167_v21 = vld [vmem:[#allocation7] sm:$0xff]  ;;  %v276_v22 = vld [vmem:[#allocation8 + $0x78] sm:$0xff]  ;;  %v275_v23 = vld [vmem:[#allocation8 + $0x70] sm:$0xff] }
  0x3b   :  { %423 = vmatprep.subr.mxu0 %v625_v0  ;;  %434 = vmatprep.subr.mxu1 %v625_v0  ;;  %v274_v24 = vld [vmem:[#allocation8 + $0x68] sm:$0xff]  ;;  %v273_v25 = vld [vmem:[#allocation8 + $0x60] sm:$0xff]  ;;  %v272_v26 = vld [vmem:[#allocation8 + $0x58] sm:$0xff] }
  0x3c   :  { %424 = vmatpush3.msra.mxu0 %v81_v7  ;;  %435 = vmatpush3.msra.mxu1 %v179_v9  ;;  %v271_v27 = vld [vmem:[#allocation8 + $0x50] sm:$0xff]  ;;  %v270_v28 = vld [vmem:[#allocation8 + $0x48] sm:$0xff]  ;;  %v269_v29 = vld [vmem:[#allocation8 + $0x40] sm:$0xff] }
  0x3d   :  { %426 = vmatmul.mubr.msk.f32.vlgmr.msra.gmra.mxu0 %vm92_vm1, %v80_v8  ;;  %436 = vmatprep.subr.mxu1 %v625_v0  ;;  %v268_v30 = vld [vmem:[#allocation8 + $0x38] sm:$0xff]  ;;  %v267_v31 = vld [vmem:[#allocation8 + $0x30] sm:$0xff]  ;;  %v266_v32 = vld [vmem:[#allocation8 + $0x28] sm:$0xff] }
  0x3e   :  { %463 = vmatprep.subr.mxu0 %v625_v0  ;;  %437 = vmatpush3.msra.mxu1 %v178_v10  ;;  %v265_v33 = vld [vmem:[#allocation8 + $0x20] sm:$0xff]  ;;  %v264_v34 = vld [vmem:[#allocation8 + $0x18] sm:$0xff]  ;;  %v263_v40 = vld [vmem:[#allocation8 + $0x10] sm:$0xff] }
  0x3f   :  { %495 = vmatprep.mubr.msk.f32.mxu0 %vm626_vm0, %v625_v0  ;;  %438 = vmatprep.subr.mxu1 %v625_v0  ;;  %v374_v35 = vld [vmem:[%s745_s2] ss:$0 sm:$0xff]  ;;  %v262_v41 = vld [vmem:[#allocation8 + $0x8] sm:$0xff]  ;;  %v261_v42 = vld [vmem:[#allocation8] sm:$0xff] }
  0x40   :  { %439 = vmatpush3.msra.mxu1 %v177_v11  ;;  %464 = vmatpush3.msra.mxu0 %v276_v22  ;;  %v376_v43 = vld [vmem:[%s747_s4] ss:$0 sm:$0xff]  ;;  %s591_s4 = scalar_lea.vmem %s364_s25, 128 }
  0x41   :  { %440 = vmatprep.subr.mxu1 %v625_v0  ;;  %465 = vmatprep.subr.mxu0 %v625_v0  ;;  %v377_v48 = vld [vmem:[%s749_s6] ss:$0 sm:$0xff]  ;;  %p592_p6 = scmp.ne.s32.totalorder %s364_s25, %s591_s4  ;;  %p597_p8 = scmp.lt.s32.totalorder %s591_s4, %s591_s4 }
  0x42   :  { %441 = vmatpush3.msra.mxu1 %v176_v12  ;;  %466 = vmatpush3.msra.mxu0 %v275_v23 }
  0x43   :  { %442 = vmatprep.subr.mxu1 %v625_v0  ;;  %467 = vmatprep.subr.mxu0 %v625_v0  ;;  %p598_p9 = por %p597_p8, %p596_p7 }
  0x44   :  { %443 = vmatpush3.msra.mxu1 %v175_v13  ;;  %468 = vmatpush3.msra.mxu0 %v274_v24 }
  0x45   :  { %444 = vmatprep.subr.mxu1 %v625_v0  ;;  %469 = vmatprep.subr.mxu0 %v625_v0  ;;  %p599_p10 = pnand %p598_p9, %p592_p6 }
  0x46   :  { %445 = vmatpush3.msra.mxu1 %v174_v14  ;;  %470 = vmatpush3.msra.mxu0 %v273_v25 }
  0x47   :  { %446 = vmatprep.subr.mxu1 %v625_v0  ;;  %471 = vmatprep.subr.mxu0 %v625_v0 }
  0x48   :  { %447 = vmatpush3.msra.mxu1 %v173_v15  ;;  %472 = vmatpush3.msra.mxu0 %v272_v26 }
  0x49   :  { %448 = vmatprep.subr.mxu1 %v625_v0  ;;  %473 = vmatprep.subr.mxu0 %v625_v0 }
  0x4a   :  { %449 = vmatpush3.msra.mxu1 %v172_v16  ;;  %474 = vmatpush3.msra.mxu0 %v271_v27 }
  0x4b   :  { %450 = vmatprep.subr.mxu1 %v625_v0  ;;  %475 = vmatprep.subr.mxu0 %v625_v0 }
  0x4c   :  { %451 = vmatpush3.msra.mxu1 %v171_v17  ;;  %476 = vmatpush3.msra.mxu0 %v270_v28 }
  0x4d   :  { %452 = vmatprep.subr.mxu1 %v625_v0  ;;  %477 = vmatprep.subr.mxu0 %v625_v0 }
  0x4e   :  { %453 = vmatpush3.msra.mxu1 %v170_v18  ;;  %478 = vmatpush3.msra.mxu0 %v269_v29 }
  0x4f   :  { %454 = vmatprep.subr.mxu1 %v625_v0  ;;  %479 = vmatprep.subr.mxu0 %v625_v0 }
  0x50   :  { %455 = vmatpush3.msra.mxu1 %v169_v19  ;;  %480 = vmatpush3.msra.mxu0 %v268_v30 }
  0x51   :  { %456 = vmatprep.subr.mxu1 %v625_v0  ;;  %481 = vmatprep.subr.mxu0 %v625_v0 }
  0x52   :  { %457 = vmatpush3.msra.mxu1 %v168_v20  ;;  %482 = vmatpush3.msra.mxu0 %v267_v31 }
  0x53   :  { %458 = vmatprep.subr.mxu1 %v625_v0  ;;  %483 = vmatprep.subr.mxu0 %v625_v0 }
  0x54   :  { %459 = vmatpush3.msra.mxu1 %v167_v21  ;;  %484 = vmatpush3.msra.mxu0 %v266_v32 }
  0x55   :  { %485 = vmatprep.subr.mxu0 %v625_v0 }
  0x56   :  { %486 = vmatpush3.msra.mxu0 %v265_v33 }
  0x57   :  { %487 = vmatprep.subr.mxu0 %v625_v0 }
  0x58   :  { %488 = vmatpush3.msra.mxu0 %v264_v34 }
  0x59   :  { %489 = vmatprep.subr.mxu0 %v625_v0 }
  0x5a   :  { %490 = vmatpush3.msra.mxu0 %v263_v40 }
  0x5b   :  { %491 = vmatprep.subr.mxu0 %v625_v0 }
  0x5c   :  { %492 = vmatpush3.msra.mxu0 %v262_v41 }
  0x5d   :  { %493 = vmatprep.subr.mxu0 %v625_v0 }
  0x5e   :  { %494 = vmatpush3.msra.mxu0 %v261_v42 }
  0xfd   :  { %v162_v36 = vpop.f32.mrf.mxu0 }
  0xfe   :  { %v163_v37 = vadd.f32 %v374_v35, %v162_v36 }
  0xff   :  { %v427_v38 = vpop.f32.mrf.mxu0 }
 0x100   :  { %v166_v39 = vmax.f32 %v163_v37, 0.0 }
 0x102   :  { %461 = vmatmul.mubr.f32.vlgmr.msra.gmra.mxu1 %v166_v39 }
 0x1c2   :  { %v256_v44 = vpop.f32.mrf.mxu1 }
 0x1c3   :  { %v257_v45 = vadd.f32 %v376_v43, %v256_v44 }
 0x1c4   :  { %v462_v46 = vpop.f32.mrf.mxu1 }
 0x1c5   :  { %v260_v47 = vmax.f32 %v257_v45, 0.0 }
 0x1c7   :  { %496 = vmatmul.mubr.f32.vlgmr.msra.gmra.mxu0 %v260_v47 }
 0x287   :  { %v350_v49 = vpop.f32.mrf.mxu0 }
 0x288   :  { %v351_v50 = vadd.f32 %v377_v48, %v350_v49 }
 0x289   :  { %v497_v51 = vpop.f32.mrf.mxu0 }
 0x28a   :  { %507 = vtanh.f32 %v351_v50 }
 0x297   :  { %v508_v52 = vpop.eup %507 }
 0x298   :  { %509 = vtanh.f32 %v508_v52 }
 0x2a5   :  { %v510_v53 = vpop.eup %509 }
 0x2a6   :  { %356 = vst [vmem:[#allocation10] sm:$0xff] %v510_v53 }
 0x2a7   :  { %602 = shalt.err (!%p599_p10)
}
 0x2a8   :  { %366 = dma.vmem_to_hbm [thread:$0]  %s364_s25, 128, %s750_s7, [#allocation4]  }
 0x2a9   :  { %617 = dma.done.wait [#allocation4], 128  }
 0x2aa   :  { %618 = vsyncadd [#allocation4], 4294967168 }
 0x2ab   :  { %370 = vsyncpa [#allocation3], 1 }
 0x2ac   :  { %371 = vsyncpa [#allocation6], 1 }
 0x2ad   :  { %372 = vsyncpa [#allocation9], 1 }
 0x2ae   :  { %373 = vsyncpa [#allocation4], 1 }

</bundles_post_ra>
